<compile_context>
chip_gen: v6e
topology: v6e:2x2x1
jax: 0.10.0
libtpu: 0.0.40
codegen_flags: <defaults>
</compile_context>

<pallas_src>
import jax
import jax.numpy as jnp
from jax.experimental import pallas as pl
from jax.experimental.pallas import tpu as pltpu

EPS = 1e-10

_LANE = 128
_SMALL_BYTES = 2 * 1024 * 1024          # whole-tensor single-block path
_BLOCK_BYTES_BUDGET = 2 * 1024 * 1024   # per-operand block budget (v5e-safe)
_TARGET_LANES = 2048                    # lane-dense tile target (mult. of 128)


def _round_up(a, b):
    return ((a + b - 1) // b) * b


def _l2norm_kernel(x_ref, w_ref, o_ref):
    # x_ref: (B, C, T) f32   w_ref: (C, 1) f32   o_ref: (B, C, T) f32
    x = x_ref[...]
    # reduction over channel axis (axis=1), keepdim — matches
    # x.pow(2).sum(dim=1, keepdim=True)
    sumsq = jnp.sum(x * x, axis=1, keepdims=True)          # (B, 1, T)
    # reciprocal computed once per spatial column, then broadcast-multiplied.
    inv = pl.reciprocal(jnp.sqrt(sumsq) + EPS, approx=False)
    w = w_ref[...][None, :, :]                              # (1, C, 1)
    o_ref[...] = (x * inv) * w


def l2norm(x_nchw, weight):
    """x_nchw: (N, C, H, W) float; weight: (C,) float."""
    N, C, H, W = x_nchw.shape
    HW = H * W
    x3 = x_nchw.reshape(N, C, HW)
    w2 = weight.reshape(C, 1).astype(x3.dtype)

    itemsize = x3.dtype.itemsize
    total_bytes = N * C * HW * itemsize

    if total_bytes <= _SMALL_BYTES:
        # Tiny problem: one grid step, whole tensor per block — pure overhead
        # amortization (pipeline depth is irrelevant at this size).
        grid = (1,)
        block = (N, C, HW)
        x_spec = pl.BlockSpec(block, lambda i: (0, 0, 0))
        o_spec = pl.BlockSpec(block, lambda i: (0, 0, 0))
        w_spec = pl.BlockSpec((C, 1), lambda i: (0, 0))
        dims = ("parallel",)
    else:
        # Streaming path: lane-dense spatial tiles, many parallel grid steps
        # so the pipeliner overlaps DMA with compute and both v7x TCs get fed.
        max_lanes = max(
            _LANE, (_BLOCK_BYTES_BUDGET // (C * itemsize)) // _LANE * _LANE
        )
        tile_hw = min(_TARGET_LANES, max_lanes, _round_up(HW, _LANE))
        grid = (N, pl.cdiv(HW, tile_hw))
        block = (1, C, tile_hw)
        x_spec = pl.BlockSpec(block, lambda n, s: (n, 0, s))
        o_spec = pl.BlockSpec(block, lambda n, s: (n, 0, s))
        w_spec = pl.BlockSpec((C, 1), lambda n, s: (0, 0))
        dims = ("parallel", "parallel")

    out = pl.pallas_call(
        _l2norm_kernel,
        out_shape=jax.ShapeDtypeStruct((N, C, HW), x3.dtype),
        grid_spec=pltpu.PrefetchScalarGridSpec(
            num_scalar_prefetch=0,
            grid=grid,
            in_specs=[x_spec, w_spec],
            out_specs=o_spec,
        ),
        compiler_params=pltpu.CompilerParams(dimension_semantics=dims),
    )(x3, w2)

    return out.reshape(N, C, H, W)


def l2norm_reference(x, weight):
    norm = jnp.sqrt(jnp.sum(x * x, axis=1, keepdims=True)) + EPS
    return weight[None, :, None, None] * x / norm


if __name__ == "__main__":
    key = jax.random.PRNGKey(0)

    # --- Test 1: module-consistent toy shape (small single-block path) -----
    # Module params: n_channels=4, scale(gamma)=20.0 (constant init, exactly
    # like torch.nn.init.constant_(self.weight, self.gamma)).
    n_channels = 4
    gamma = 20.0
    weight = jnp.full((n_channels,), gamma, dtype=jnp.float32)

    k1, k2, k3 = jax.random.split(key, 3)
    x = jax.random.normal(k1, (2, n_channels, 16, 16), dtype=jnp.float32)

    out = jax.block_until_ready(l2norm(x, weight))
    ref = l2norm_reference(x, weight)
    assert out.shape == x.shape
    assert jnp.allclose(out, ref, atol=1e-5, rtol=1e-5)

    # --- Test 2: larger shape exercising the tiled (N, HW-tiles) grid path --
    C2 = 128
    x_big = jax.random.normal(k2, (2, C2, 64, 64), dtype=jnp.float32)
    w_big = jax.random.normal(k3, (C2,), dtype=jnp.float32)

    out_big = jax.block_until_ready(l2norm(x_big, w_big))
    ref_big = l2norm_reference(x_big, w_big)
    assert out_big.shape == x_big.shape
    assert jnp.allclose(out_big, ref_big, atol=1e-5, rtol=1e-5)

    print("KERNEL_OK")
</pallas_src>

<mosaic_0001>
module attributes {stable_mosaic.version = 11 : i64} {
  func.func @_l2norm_kernel(%arg0: i32, %arg1: memref<2x4x256xf32, #tpu.memory_space<vmem>>, %arg2: memref<4x1xf32, #tpu.memory_space<vmem>>, %arg3: memref<2x4x256xf32, #tpu.memory_space<vmem>>) attributes {dimension_semantics = [#tpu.dimension_semantics<parallel>], iteration_bounds = array<i64: 1>, scalar_prefetch = 0 : i64, scratch_operands = 0 : i64, tpu.core_type = #tpu.core_type<tc>, window_params = [{pipeline_mode = #tpu.pipeline_mode<synchronous>, transform_indices = @transform_0, window_bounds = array<i64: 2, 4, 256>}, {pipeline_mode = #tpu.pipeline_mode<synchronous>, transform_indices = @transform_1, window_bounds = array<i64: 4, 1>}, {pipeline_mode = #tpu.pipeline_mode<synchronous>, transform_indices = @transform_2, window_bounds = array<i64: 2, 4, 256>}]} {
    %c0 = arith.constant 0 : index
    %c0_0 = arith.constant 0 : index
    %c0_1 = arith.constant 0 : index
    %0 = vector.load %arg1[%c0, %c0_0, %c0_1] : memref<2x4x256xf32, #tpu.memory_space<vmem>>, vector<2x4x256xf32>
    %1 = arith.mulf %0, %0 : vector<2x4x256xf32>
    %cst = arith.constant dense<0.000000e+00> : vector<2x256xf32>
    %2 = vector.multi_reduction <add>, %1, %cst [1] : vector<2x4x256xf32> to vector<2x256xf32>
    %3 = vector.shape_cast %2 : vector<2x256xf32> to vector<2x1x256xf32>
    %4 = math.sqrt %3 : vector<2x1x256xf32>
    %cst_2 = arith.constant 1.000000e-10 : f32
    %5 = vector.broadcast %cst_2 : f32 to vector<2x1x256xf32>
    %6 = arith.addf %4, %5 : vector<2x1x256xf32>
    %7 = tpu.reciprocal %6 : vector<2x1x256xf32> -> vector<2x1x256xf32>
    %c0_3 = arith.constant 0 : index
    %c0_4 = arith.constant 0 : index
    %8 = vector.load %arg2[%c0_3, %c0_4] : memref<4x1xf32, #tpu.memory_space<vmem>>, vector<4x1xf32>
    %9 = vector.shape_cast %8 : vector<4x1xf32> to vector<1x4x1xf32>
    %10 = vector.broadcast %7 : vector<2x1x256xf32> to vector<2x4x256xf32>
    %11 = arith.mulf %0, %10 : vector<2x4x256xf32>
    %12 = vector.broadcast %9 : vector<1x4x1xf32> to vector<2x4x256xf32>
    %13 = arith.mulf %11, %12 : vector<2x4x256xf32>
    %c0_5 = arith.constant 0 : index
    %c0_6 = arith.constant 0 : index
    %c0_7 = arith.constant 0 : index
    %14 = vector.load %arg3[%c0_5, %c0_6, %c0_7] : memref<2x4x256xf32, #tpu.memory_space<vmem>>, vector<2x4x256xf32>
    tpu.vector_store %arg3[%c0_5, %c0_6, %c0_7], %13 {strides = array<i32>} : memref<2x4x256xf32, #tpu.memory_space<vmem>>, vector<2x4x256xf32>,
    return
  }
  func.func @transform_0(%arg0: i32) -> (i32, i32, i32) {
    %c0_i32 = arith.constant 0 : i32
    %c0_i32_0 = arith.constant 0 : i32
    %c0_i32_1 = arith.constant 0 : i32
    %c0_i32_2 = arith.constant 0 : i32
    return %c0_i32, %c0_i32_0, %c0_i32_1 : i32, i32, i32
  }
  func.func @transform_1(%arg0: i32) -> (i32, i32) {
    %c0_i32 = arith.constant 0 : i32
    %c0_i32_0 = arith.constant 0 : i32
    %c0_i32_1 = arith.constant 0 : i32
    return %c0_i32, %c0_i32_0 : i32, i32
  }
  func.func @transform_2(%arg0: i32) -> (i32, i32, i32) {
    %c0_i32 = arith.constant 0 : i32
    %c0_i32_0 = arith.constant 0 : i32
    %c0_i32_1 = arith.constant 0 : i32
    %c0_i32_2 = arith.constant 0 : i32
    return %c0_i32, %c0_i32_0, %c0_i32_1 : i32, i32, i32
  }
}

</mosaic_0001>

<bundles_post_ra>
// kernel: tpu_custom_call.1
= control target key start
LH: loop header
LB: loop body
LE: loop exit
PB: predicated region body
PF: predicated region fallthrough
CT: control target
= control target key end

     0   :  { %7 = vsyncpa [#allocation3], 0  ;;  %s258_s0 = inlined_call_operand.hbm [shape: f32[2,4,256], index: 0, kind: input, shape index: {}]   ;;  %s259_s1 = inlined_call_operand.vmem [shape: f32[4,1], index: 1, kind: input, shape index: {}]   ;;  %s260_s2 = inlined_call_operand.hbm [shape: f32[2,4,256], index: 2, kind: output, shape index: {}]  }
   0x1   :  { %8 = vsyncpa [#allocation4], 0  ;;  %s212_s9 = smov [#allocation2]  }
   0x2   :  { %s14_s10 = sshll.u32 %s212_s9, 4  ;;  %s15_s10 = int_to_ptr.vmem [resolvable:$true] %s14_s10 }
   0x3   :  { %s176_s11 = scalar_lea.vmem %s15_s10, 256  ;;  %p181_p1 = scmp.lt.s32.totalorder %s15_s10, %s15_s10 }
   0x4   :  { %p177_p0 = scmp.ne.s32.totalorder %s15_s10, %s176_s11  ;;  %p182_p2 = scmp.lt.s32.totalorder %s176_s11, %s176_s11 }
   0x6   :  { %p183_p3 = por %p182_p2, %p181_p1 }
   0x8   :  { %p184_p4 = pnand %p183_p3, %p177_p0 }
   0xa   :  { %187 = shalt.err (!%p184_p4)
}
   0xb   :  { %s213_s12 = smov 128   ;;  %s214_s13 = smov 8  }
   0xc   :  { %20 = dma.hbm_to_vmem [thread:$0]  %s258_s0, 256, %s15_s10, [#allocation3], %s213_s12, %s213_s12, %s214_s13  }
   0xd   :  { %208 = dma.done.wait [#allocation3], 256  }
   0xe   :  { %209 = vsyncadd [#allocation3], 4294967040  ;;  %v215_v0 = vmov 0   ;;  %v101_v1 = vld [vmem:[%s259_s1] sm:$0xf]  ;;  %v244_v3 = vld [vmem:[#allocation2 + $0x8] sm:$0xff]  ;;  %v119_v63 = vlaneseq }
   0xf   :  { %151 = vset.pattern.permute.xlu0 %v215_v0  ;;  %v242_v2 = vld [vmem:[#allocation2] sm:$0xff]  ;;  %v29_v5 = vmul.f32 %v244_v3, %v244_v3  ;;  %vm36_vm0 = vcmask 1043456   ;;  %v216_v61 = vmov 839922192   ;;  %s217_s0 = smov [#allocation5]  }
  0x10   :  { %114 = vperm.xlu0 %151, %v101_v1   ;;  %v28_v4 = vmul.f32 %v242_v2, %v242_v2  ;;  %v117_v62 = vunpack.c.l.s4 %v216_v61  ;;  %s133_s1 = sshll.u32 %s217_s0, 4  ;;  %s134_s1 = int_to_ptr.vmem [resolvable:$true] %s133_s1 }
  0x11   :  { %v33_v7 = vcombine.high %v29_v5, %v29_v5  ;;  %v51_v9 = vsel %vm36_vm0, %v29_v5, 0.0  ;;  %s188_s18 = scalar_lea.vmem %s134_s1, 256  ;;  %p193_p6 = scmp.lt.s32.totalorder %s134_s1, %s134_s1 }
  0x12   :  { %v32_v6 = vcombine.high %v28_v4, %v28_v4  ;;  %v37_v8 = vsel %vm36_vm0, %v28_v4, 0.0  ;;  %v52_v13 = vrot.slane %v51_v9, 4  ;;  %v118_v5 = vunpack.c.0.s8 %v117_v62  ;;  %p189_p5 = scmp.ne.s32.totalorder %s134_s1, %s188_s18  ;;  %p194_p7 = scmp.lt.s32.totalorder %s188_s18, %s188_s18 }
  0x13   :  { %v38_v11 = vrot.slane %v37_v8, 4  ;;  %v58_v12 = vsel %vm36_vm0, %v33_v7, 0.0 }
  0x14   :  { %v44_v10 = vsel %vm36_vm0, %v32_v6, 0.0  ;;  %v59_v15 = vrot.slane %v58_v12, 4  ;;  %v53_v17 = vadd.f32 %v52_v13, %v51_v9  ;;  %v120_v6 = vshrl.u32 %v119_v63, 7  ;;  %p195_p8 = por %p194_p7, %p193_p6 }
  0x15   :  { %v45_v14 = vrot.slane %v44_v10, 4  ;;  %v39_v16 = vadd.f32 %v38_v11, %v37_v8 }
  0x16   :  { %v60_v19 = vadd.f32 %v59_v15, %v58_v12  ;;  %v54_v21 = vrot.slane %v53_v17, 2  ;;  %v121_v9 = vsub.s32 %v118_v5, %v120_v6  ;;  %p196_p9 = pnand %p195_p8, %p189_p5 }
  0x17   :  { %v46_v18 = vadd.f32 %v45_v14, %v44_v10  ;;  %v40_v20 = vrot.slane %v39_v16, 2 }
  0x18   :  { %v61_v23 = vrot.slane %v60_v19, 2  ;;  %v55_v25 = vadd.f32 %v54_v21, %v53_v17 }
  0x19   :  { %v47_v22 = vrot.slane %v46_v18, 2  ;;  %v41_v24 = vadd.f32 %v40_v20, %v39_v16 }
  0x1a   :  { %v62_v27 = vadd.f32 %v61_v23, %v60_v19  ;;  %v56_v29 = vrot.slane %v55_v25, 1 }
  0x1b   :  { %v48_v26 = vadd.f32 %v47_v22, %v46_v18  ;;  %v42_v28 = vrot.slane %v41_v24, 1 }
  0x1c   :  { %v63_v31 = vrot.slane %v62_v27, 1  ;;  %v57_v33 = vadd.f32 %v56_v29, %v55_v25 }
  0x1d   :  { %v49_v30 = vrot.slane %v48_v26, 1  ;;  %v43_v32 = vadd.f32 %v42_v28, %v41_v24 }
  0x1e   :  { %v64_v35 = vadd.f32 %v63_v31, %v62_v27  ;;  %vm81_vm2 = vcmp.eq.f32.partialorder %v57_v33, inf  ;;  %v84_v46 = vand.u32 2147483648, %v57_v33  ;;  %vm83_vm6 = vcmp.eq.f32.partialorder %v57_v33, 0.0 }
  0x1f   :  { %v50_v34 = vadd.f32 %v49_v30, %v48_v26  ;;  %152 = vrsqrt.f32 %v43_v32  ;;  %vm67_vm1 = vcmp.eq.f32.partialorder %v43_v32, inf  ;;  %v70_v43 = vand.u32 2147483648, %v43_v32 }
  0x20   :  { %154 = vrsqrt.f32 %v57_v33  ;;  %vm69_vm4 = vcmp.eq.f32.partialorder %v43_v32, 0.0  ;;  %vm88_vm5 = vcmp.eq.f32.partialorder %v64_v35, inf  ;;  %v91_v50 = vand.u32 2147483648, %v64_v35 }
  0x21   :  { %156 = vrsqrt.f32 %v50_v34  ;;  %vm74_vm3 = vcmp.eq.f32.partialorder %v50_v34, inf  ;;  %v77_v47 = vand.u32 2147483648, %v50_v34  ;;  %vm76_vm7 = vcmp.eq.f32.partialorder %v50_v34, 0.0 }
  0x22   :  { %158 = vrsqrt.f32 %v64_v35  ;;  %vm90_vm8 = vcmp.eq.f32.partialorder %v64_v35, 0.0 }
  0x2c   :  { %v153_v36 = vpop.eup %152 }
  0x2d   :  { %v155_v37 = vpop.eup %154  ;;  %v66_v40 = vmul.f32 %v153_v36, %v43_v32 }
  0x2e   :  { %v157_v38 = vpop.eup %156  ;;  %v80_v41 = vmul.f32 %v155_v37, %v57_v33 }
  0x2f   :  { %v159_v39 = vpop.eup %158  ;;  %v73_v42 = vmul.f32 %v157_v38, %v50_v34  ;;  %v68_v45 = vsel %vm67_vm1, %v43_v32, %v66_v40 }
  0x30   :  { %v87_v44 = vmul.f32 %v159_v39, %v64_v35  ;;  %v82_v48 = vsel %vm81_vm2, %v57_v33, %v80_v41  ;;  %v71_v51 = vsel %vm69_vm4, %v70_v43, %v68_v45 }
  0x31   :  { %v75_v49 = vsel %vm74_vm3, %v50_v34, %v73_v42  ;;  %v85_v53 = vsel %vm83_vm6, %v84_v46, %v82_v48  ;;  %v93_v56 = vadd.f32 1e-10, %v71_v51 }
  0x32   :  { %v89_v52 = vsel %vm88_vm5, %v64_v35, %v87_v44  ;;  %v78_v54 = vsel %vm76_vm7, %v77_v47, %v75_v49  ;;  %v95_v57 = vadd.f32 1e-10, %v85_v53 }
  0x33   :  { %v92_v55 = vsel %vm90_vm8, %v91_v50, %v89_v52  ;;  %v94_v58 = vadd.f32 1e-10, %v78_v54  ;;  %160 = vrcp.f32 %v93_v56 }
  0x34   :  { %v96_v59 = vadd.f32 1e-10, %v92_v55  ;;  %162 = vrcp.f32 %v95_v57 }
  0x35   :  { %164 = vrcp.f32 %v94_v58 }
  0x36   :  { %166 = vrcp.f32 %v96_v59 }
  0x40   :  { %v161_v60 = vpop.eup %160 }
  0x41   :  { %v163_v0 = vpop.eup %162 }
  0x42   :  { %v165_v1 = vpop.eup %164 }
  0x43   :  { %v167_v4 = vpop.eup %166  ;;  %v106_v7 = vcombine.low %v161_v60, %v165_v1 }
  0x44   :  { %v107_v8 = vcombine.low %v163_v0, %v167_v4 }
  0x45   :  { %v110_v10 = vmul.f32 %v106_v7, %v242_v2 }
  0x46   :  { %v111_v11 = vmul.f32 %v107_v8, %v244_v3 }
  0x8b   :  { %v115_v12 = vpop.permute.xlu0 %114 }
  0x8c   :  { %v122_v13 = vrot.slane %v115_v12, %v121_v9 }
  0x8e   :  { %v124_v14 = vmul.f32 %v122_v13, %v110_v10  ;;  %v125_v15 = vmul.f32 %v122_v13, %v111_v11 }
  0x90   :  { %126 = vst [vmem:[#allocation5] sm:$0xff] %v124_v14  ;;  %127 = vst [vmem:[#allocation5 + $0x8] sm:$0xff] %v125_v15 }
  0x91   :  { %199 = shalt.err (!%p196_p9)
}
  0x92   :  { %139 = dma.vmem_to_hbm [thread:$0]  %s134_s1, 256, %s260_s2, [#allocation4], %s213_s12, %s213_s12, %s214_s13  }
  0x93   :  { %210 = dma.done.wait [#allocation4], 256  }
  0x94   :  { %211 = vsyncadd [#allocation4], 4294967040 }
  0x95   :  { %143 = vsyncpa [#allocation3], 1 }
  0x96   :  { %144 = vsyncpa [#allocation4], 1 }

</bundles_post_ra>
